<compile_context>
chip_gen: v5e
topology: v5e:2x2
jax: 0.10.0
libtpu: 0.0.40
codegen_flags: <defaults>
</compile_context>

<pallas_src>
import jax
import jax.numpy as jnp
from jax import lax
from jax.experimental import pallas as pl
from jax.experimental.pallas import tpu as pltpu

BIAS = False
RELU = False
CAUSAL = True

B, T, D_MODEL = 2, 8, 32
NUM_HEADS, HEAD_SIZE = 4, 8

# Operand dtype for MXU matmuls. f32 at this toy size (keeps the check tight);
# use jnp.bfloat16 at real sizes (weights are pre-cast once in prepare_fused_params,
# softmax math and accumulators stay f32 via preferred_element_type).
MXU_DTYPE = jnp.float32


# ----------------------------------------------------------------------------
# Kernel: one grid step == one batch element.
#   QKV projection (one GEMM), per-head attention with causal + valid-length
#   masking and dead-row handling, per-head accumulation into the output
#   projection (no concat), single 2-D lane-dense store.
# ----------------------------------------------------------------------------
def _mha_kernel(vl_ref, x_ref, wqkv_ref, wproj_ref, bproj_ref, out_ref):
    # vl_ref   : SMEM (B,) int32 (scalar prefetch: valid lengths)
    # x_ref    : VMEM (T, D) f32  -- this batch's rows of the flattened (B*T, D) input
    # wqkv_ref : VMEM (D, 3*H*HS) -- [Q_allheads | K_allheads | V_allheads], scale in Q
    # wproj_ref: VMEM (H*HS, D)
    # bproj_ref: VMEM (1, D) f32
    # out_ref  : VMEM (T, D) f32
    t, d = x_ref.shape
    hhs = NUM_HEADS * HEAD_SIZE
    vl = vl_ref[pl.program_id(0)]

    # One GEMM for all heads' q/k/v.
    qkv = jnp.dot(x_ref[...].astype(MXU_DTYPE), wqkv_ref[...],
                  preferred_element_type=jnp.float32)            # (T, 3*H*HS) f32
    if RELU:
        qkv = jnp.maximum(qkv, 0.0)

    # (T, T) masks: causal + valid-length (create_mask in the PyTorch spec).
    row = lax.broadcasted_iota(jnp.int32, (t, t), 0)
    col = lax.broadcasted_iota(jnp.int32, (t, t), 1)
    keep = jnp.logical_and(row < vl, col < vl)
    if CAUSAL:
        keep = jnp.logical_and(keep, row >= col)
    # Row fully masked iff its position >= valid_len (torch row_mask branch).
    row_dead = lax.broadcasted_iota(jnp.int32, (t, 1), 0) >= vl   # (T, 1) bool

    acc = jnp.zeros((t, d), jnp.float32)
    for h in range(NUM_HEADS):
        q_h = qkv[:, h * HEAD_SIZE:(h + 1) * HEAD_SIZE]
        k_h = qkv[:, hhs + h * HEAD_SIZE: hhs + (h + 1) * HEAD_SIZE]
        v_h = qkv[:, 2 * hhs + h * HEAD_SIZE: 2 * hhs + (h + 1) * HEAD_SIZE]

        # Scores (scale already folded into the Q weights): (T, T).
        s = lax.dot_general(q_h.astype(MXU_DTYPE), k_h.astype(MXU_DTYPE),
                            (((1,), (1,)), ((), ())),
                            preferred_element_type=jnp.float32)

        wei = jnp.where(keep, s, -jnp.inf)
        wei = jnp.where(row_dead, 0.0, wei)           # keep dead rows finite (no 0/0)
        m = jnp.max(wei, axis=1, keepdims=True)
        e = jnp.exp(wei - m)
        sm = e / jnp.sum(e, axis=1, keepdims=True)    # exact divide; EUP not the bottleneck
        sm = jnp.where(row_dead, 0.0, sm)

        head_out = jnp.dot(sm.astype(MXU_DTYPE), v_h.astype(MXU_DTYPE),
                           preferred_element_type=jnp.float32)    # (T, HS)

        # Per-head accumulation into the output projection (replaces concat).
        w_h = wproj_ref[h * HEAD_SIZE:(h + 1) * HEAD_SIZE, :]     # sublane-aligned slice
        acc = acc + jnp.dot(head_out.astype(MXU_DTYPE), w_h,
                            preferred_element_type=jnp.float32)

    out_ref[...] = (acc + bproj_ref[...]).astype(out_ref.dtype)


def multi_head_attention(x, valid_lens, fused_params):
    b, t, d = x.shape
    hhs = NUM_HEADS * HEAD_SIZE
    # Flatten on the HBM array in the wrapper (free), not inside the kernel.
    x2d = x.reshape(b * t, d)
    w_qkv = fused_params["w_qkv"]
    w_proj = fused_params["w_proj"]
    b_proj = fused_params["b_proj"]

    grid_spec = pltpu.PrefetchScalarGridSpec(
        num_scalar_prefetch=1,
        grid=(b,),
        in_specs=[
            pl.BlockSpec((t, d), lambda i, vl: (i, 0)),
            pl.BlockSpec((d, 3 * hhs), lambda i, vl: (0, 0)),
            pl.BlockSpec((hhs, d), lambda i, vl: (0, 0)),
            pl.BlockSpec((1, d), lambda i, vl: (0, 0)),
        ],
        out_specs=pl.BlockSpec((t, d), lambda i, vl: (i, 0)),
    )
    out2d = pl.pallas_call(
        _mha_kernel,
        out_shape=jax.ShapeDtypeStruct((b * t, d), jnp.float32),
        grid_spec=grid_spec,
        compiler_params=pltpu.CompilerParams(
            # Batch axis is independent -> shards across v7x's 2 TensorCores.
            dimension_semantics=("parallel",)),
    )(valid_lens, x2d, w_qkv, w_proj, b_proj)
    return out2d.reshape(b, t, d)


# ----------------------------------------------------------------------------
# One-time static parameter transform: fuse per-head q/k/v weights into a
# single (D, 3*H*HS) matrix, fold 1/sqrt(head_size) into Q (before any cast),
# and pre-cast matmul weights to MXU_DTYPE.
# ----------------------------------------------------------------------------
def prepare_fused_params(params):
    h, d, hs = params["wq"].shape
    scale = hs ** (-0.5)

    def to_cols(w):  # (H, D, HS) -> (D, H*HS), head h at columns h*HS:(h+1)*HS
        return jnp.transpose(w, (1, 0, 2)).reshape(d, h * hs)

    w_qkv = jnp.concatenate(
        [to_cols(params["wq"] * scale), to_cols(params["wk"]), to_cols(params["wv"])],
        axis=-1).astype(MXU_DTYPE)
    return {"w_qkv": w_qkv,
            "w_proj": params["w_proj"].astype(MXU_DTYPE),
            "b_proj": params["b_proj"].astype(jnp.float32)}


# ----------------------------------------------------------------------------
# Pure-JAX reference (mirrors the PyTorch forward) for a correctness check.
# ----------------------------------------------------------------------------
def reference(x, valid_lens, params):
    b, t, d = x.shape
    with jax.default_matmul_precision("highest"):
        outs = []
        tril = jnp.tril(jnp.ones((t, t), jnp.float32))
        col = jnp.arange(t)[None, :] < valid_lens[:, None]          # (B, T)
        mask = col[:, :, None].astype(jnp.float32) * col[:, None, :].astype(jnp.float32)
        for h in range(params["wq"].shape[0]):
            q = x @ params["wq"][h]
            k = x @ params["wk"][h]
            v = x @ params["wv"][h]
            if RELU:
                q, k, v = jnp.maximum(q, 0), jnp.maximum(k, 0), jnp.maximum(v, 0)
            wei = jnp.einsum("bqh,bkh->bqk", q, k) * (k.shape[-1] ** -0.5)
            if CAUSAL:
                wei = jnp.where(tril == 0, -jnp.inf, wei)
            wei = jnp.where(mask == 0, -jnp.inf, wei)
            row_dead = jnp.all(jnp.isinf(wei), axis=2, keepdims=True)
            sm = jax.nn.softmax(jnp.where(row_dead, 0.0, wei), axis=2)
            wei = jnp.where(row_dead, 0.0, sm)
            outs.append(jnp.einsum("bqk,bkh->bqh", wei, v))
        cat = jnp.concatenate(outs, axis=-1)
        return cat @ params["w_proj"] + params["b_proj"]


def init_params(key):
    ks = jax.random.split(key, 5)
    scale = 0.1
    return {
        "wq": scale * jax.random.normal(ks[0], (NUM_HEADS, D_MODEL, HEAD_SIZE), jnp.float32),
        "wk": scale * jax.random.normal(ks[1], (NUM_HEADS, D_MODEL, HEAD_SIZE), jnp.float32),
        "wv": scale * jax.random.normal(ks[2], (NUM_HEADS, D_MODEL, HEAD_SIZE), jnp.float32),
        "w_proj": scale * jax.random.normal(ks[3], (NUM_HEADS * HEAD_SIZE, D_MODEL), jnp.float32),
        "b_proj": scale * jax.random.normal(ks[4], (1, D_MODEL), jnp.float32),
    }


if __name__ == "__main__":
    key = jax.random.PRNGKey(0)
    kx, kp = jax.random.split(key)
    x = jax.random.normal(kx, (B, T, D_MODEL), jnp.float32)
    valid_lens = jnp.array([5, 8], dtype=jnp.int32)   # batch 0 padded, batch 1 full
    params = init_params(kp)
    fused_params = prepare_fused_params(params)       # one-time static weight transform

    out = multi_head_attention(x, valid_lens, fused_params)
    out = jax.block_until_ready(out)

    ref = reference(x, valid_lens, params)
    assert out.shape == (B, T, D_MODEL)
    assert jnp.allclose(out, ref, atol=2e-3, rtol=2e-3), float(jnp.max(jnp.abs(out - ref)))
    print("KERNEL_OK")
</pallas_src>

<mosaic_0001>
module attributes {stable_mosaic.version = 11 : i64} {
  func.func @_mha_kernel(%arg0: i32, %arg1: memref<2xi32, #tpu.memory_space<smem>>, %arg2: memref<8x32xf32, #tpu.memory_space<vmem>>, %arg3: memref<32x96xf32, #tpu.memory_space<vmem>>, %arg4: memref<32x32xf32, #tpu.memory_space<vmem>>, %arg5: memref<1x32xf32, #tpu.memory_space<vmem>>, %arg6: memref<8x32xf32, #tpu.memory_space<vmem>>) attributes {dimension_semantics = [#tpu.dimension_semantics<parallel>], iteration_bounds = array<i64: 2>, scalar_prefetch = 1 : i64, scratch_operands = 0 : i64, tpu.core_type = #tpu.core_type<tc>, window_params = [{transform_indices = @transform_0, window_bounds = array<i64: 8, 32>}, {pipeline_mode = #tpu.pipeline_mode<synchronous>, transform_indices = @transform_1, window_bounds = array<i64: 32, 96>}, {pipeline_mode = #tpu.pipeline_mode<synchronous>, transform_indices = @transform_2, window_bounds = array<i64: 32, 32>}, {pipeline_mode = #tpu.pipeline_mode<synchronous>, transform_indices = @transform_3, window_bounds = array<i64: 1, 32>}, {transform_indices = @transform_4, window_bounds = array<i64: 8, 32>}]} {
    %0 = arith.index_cast %arg0 : i32 to index
    %1 = memref.load %arg1[%0] : memref<2xi32, #tpu.memory_space<smem>>
    %c0 = arith.constant 0 : index
    %c0_0 = arith.constant 0 : index
    %2 = vector.load %arg2[%c0, %c0_0] : memref<8x32xf32, #tpu.memory_space<vmem>>, vector<8x32xf32>
    %c0_1 = arith.constant 0 : index
    %c0_2 = arith.constant 0 : index
    %3 = vector.load %arg3[%c0_1, %c0_2] : memref<32x96xf32, #tpu.memory_space<vmem>>, vector<32x96xf32>
    %cst = arith.constant dense<0.000000e+00> : vector<8x96xf32>
    %4 = tpu.matmul %2, %3, %cst {dimension_numbers = #tpu.dot_dimension_numbers<[1], [0], [0], [1], [0, 0, 1, 1], [], []>} : vector<8x32xf32>, vector<32x96xf32>, vector<8x96xf32> -> vector<8x96xf32>
    %5 = tpu.iota {dimensions = array<i32: 0>} : vector<8x8xi32>
    %6 = tpu.iota {dimensions = array<i32: 1>} : vector<8x8xi32>
    %7 = vector.broadcast %1 : i32 to vector<8x8xi32>
    %8 = arith.cmpi slt, %5, %7 : vector<8x8xi32>
    %9 = vector.broadcast %1 : i32 to vector<8x8xi32>
    %10 = arith.cmpi slt, %6, %9 : vector<8x8xi32>
    %11 = arith.andi %8, %10 : vector<8x8xi1>
    %12 = arith.cmpi sge, %5, %6 : vector<8x8xi32>
    %13 = arith.andi %11, %12 : vector<8x8xi1>
    %14 = tpu.iota {dimensions = array<i32: 0>} : vector<8x1xi32>
    %15 = vector.broadcast %1 : i32 to vector<8x1xi32>
    %16 = arith.cmpi sge, %14, %15 : vector<8x1xi32>
    %cst_3 = arith.constant 0.000000e+00 : f32
    %17 = vector.broadcast %cst_3 : f32 to vector<8x32xf32>
    %18 = vector.extract_strided_slice %4 {offsets = [0, 0], sizes = [8, 8], strides = [1, 1]} : vector<8x96xf32> to vector<8x8xf32>
    %19 = vector.extract_strided_slice %4 {offsets = [0, 32], sizes = [8, 8], strides = [1, 1]} : vector<8x96xf32> to vector<8x8xf32>
    %20 = vector.extract_strided_slice %4 {offsets = [0, 64], sizes = [8, 8], strides = [1, 1]} : vector<8x96xf32> to vector<8x8xf32>
    %cst_4 = arith.constant dense<0.000000e+00> : vector<8x8xf32>
    %21 = tpu.matmul %18, %19, %cst_4 {dimension_numbers = #tpu.dot_dimension_numbers<[1], [1], [0], [0], [0, 0, 1, 0], [], []>} : vector<8x8xf32>, vector<8x8xf32>, vector<8x8xf32> -> vector<8x8xf32>
    %cst_5 = arith.constant 0xFF800000 : f32
    %22 = vector.broadcast %cst_5 : f32 to vector<8x8xf32>
    %23 = arith.select %13, %21, %22 : vector<8x8xi1>, vector<8x8xf32>
    %cst_6 = arith.constant 0.000000e+00 : f32
    %24 = vector.shape_cast %16 : vector<8x1xi1> to vector<8x1xi1>
    %25 = vector.broadcast %24 : vector<8x1xi1> to vector<8x8xi1>
    %26 = vector.broadcast %cst_6 : f32 to vector<8x8xf32>
    %27 = arith.select %25, %26, %23 : vector<8x8xi1>, vector<8x8xf32>
    %cst_7 = arith.constant dense<0xFF800000> : vector<8xf32>
    %28 = vector.multi_reduction <maximumf>, %27, %cst_7 [1] : vector<8x8xf32> to vector<8xf32>
    %29 = vector.shape_cast %28 : vector<8xf32> to vector<8x1xf32>
    %30 = vector.broadcast %29 : vector<8x1xf32> to vector<8x8xf32>
    %31 = arith.subf %27, %30 : vector<8x8xf32>
    %32 = math.exp %31 : vector<8x8xf32>
    %cst_8 = arith.constant dense<0.000000e+00> : vector<8xf32>
    %33 = vector.multi_reduction <add>, %32, %cst_8 [1] : vector<8x8xf32> to vector<8xf32>
    %34 = vector.shape_cast %33 : vector<8xf32> to vector<8x1xf32>
    %35 = vector.broadcast %34 : vector<8x1xf32> to vector<8x8xf32>
    %36 = arith.divf %32, %35 : vector<8x8xf32>
    %cst_9 = arith.constant 0.000000e+00 : f32
    %37 = vector.shape_cast %16 : vector<8x1xi1> to vector<8x1xi1>
    %38 = vector.broadcast %37 : vector<8x1xi1> to vector<8x8xi1>
    %39 = vector.broadcast %cst_9 : f32 to vector<8x8xf32>
    %40 = arith.select %38, %39, %36 : vector<8x8xi1>, vector<8x8xf32>
    %cst_10 = arith.constant dense<0.000000e+00> : vector<8x8xf32>
    %41 = tpu.matmul %40, %20, %cst_10 {dimension_numbers = #tpu.dot_dimension_numbers<[1], [0], [0], [1], [0, 0, 1, 1], [], []>} : vector<8x8xf32>, vector<8x8xf32>, vector<8x8xf32> -> vector<8x8xf32>
    %c0_11 = arith.constant 0 : index
    %c0_12 = arith.constant 0 : index
    %42 = vector.load %arg4[%c0_11, %c0_12] : memref<32x32xf32, #tpu.memory_space<vmem>>, vector<8x32xf32>
    %cst_13 = arith.constant dense<0.000000e+00> : vector<8x32xf32>
    %43 = tpu.matmul %41, %42, %cst_13 {dimension_numbers = #tpu.dot_dimension_numbers<[1], [0], [0], [1], [0, 0, 1, 1], [], []>} : vector<8x8xf32>, vector<8x32xf32>, vector<8x32xf32> -> vector<8x32xf32>
    %44 = arith.addf %17, %43 : vector<8x32xf32>
    %45 = vector.extract_strided_slice %4 {offsets = [0, 8], sizes = [8, 8], strides = [1, 1]} : vector<8x96xf32> to vector<8x8xf32>
    %46 = vector.extract_strided_slice %4 {offsets = [0, 40], sizes = [8, 8], strides = [1, 1]} : vector<8x96xf32> to vector<8x8xf32>
    %47 = vector.extract_strided_slice %4 {offsets = [0, 72], sizes = [8, 8], strides = [1, 1]} : vector<8x96xf32> to vector<8x8xf32>
    %cst_14 = arith.constant dense<0.000000e+00> : vector<8x8xf32>
    %48 = tpu.matmul %45, %46, %cst_14 {dimension_numbers = #tpu.dot_dimension_numbers<[1], [1], [0], [0], [0, 0, 1, 0], [], []>} : vector<8x8xf32>, vector<8x8xf32>, vector<8x8xf32> -> vector<8x8xf32>
    %cst_15 = arith.constant 0xFF800000 : f32
    %49 = vector.broadcast %cst_15 : f32 to vector<8x8xf32>
    %50 = arith.select %13, %48, %49 : vector<8x8xi1>, vector<8x8xf32>
    %cst_16 = arith.constant 0.000000e+00 : f32
    %51 = vector.shape_cast %16 : vector<8x1xi1> to vector<8x1xi1>
    %52 = vector.broadcast %51 : vector<8x1xi1> to vector<8x8xi1>
    %53 = vector.broadcast %cst_16 : f32 to vector<8x8xf32>
    %54 = arith.select %52, %53, %50 : vector<8x8xi1>, vector<8x8xf32>
    %cst_17 = arith.constant dense<0xFF800000> : vector<8xf32>
    %55 = vector.multi_reduction <maximumf>, %54, %cst_17 [1] : vector<8x8xf32> to vector<8xf32>
    %56 = vector.shape_cast %55 : vector<8xf32> to vector<8x1xf32>
    %57 = vector.broadcast %56 : vector<8x1xf32> to vector<8x8xf32>
    %58 = arith.subf %54, %57 : vector<8x8xf32>
    %59 = math.exp %58 : vector<8x8xf32>
    %cst_18 = arith.constant dense<0.000000e+00> : vector<8xf32>
    %60 = vector.multi_reduction <add>, %59, %cst_18 [1] : vector<8x8xf32> to vector<8xf32>
    %61 = vector.shape_cast %60 : vector<8xf32> to vector<8x1xf32>
    %62 = vector.broadcast %61 : vector<8x1xf32> to vector<8x8xf32>
    %63 = arith.divf %59, %62 : vector<8x8xf32>
    %cst_19 = arith.constant 0.000000e+00 : f32
    %64 = vector.shape_cast %16 : vector<8x1xi1> to vector<8x1xi1>
    %65 = vector.broadcast %64 : vector<8x1xi1> to vector<8x8xi1>
    %66 = vector.broadcast %cst_19 : f32 to vector<8x8xf32>
    %67 = arith.select %65, %66, %63 : vector<8x8xi1>, vector<8x8xf32>
    %cst_20 = arith.constant dense<0.000000e+00> : vector<8x8xf32>
    %68 = tpu.matmul %67, %47, %cst_20 {dimension_numbers = #tpu.dot_dimension_numbers<[1], [0], [0], [1], [0, 0, 1, 1], [], []>} : vector<8x8xf32>, vector<8x8xf32>, vector<8x8xf32> -> vector<8x8xf32>
    %c8 = arith.constant 8 : index
    %c0_21 = arith.constant 0 : index
    %69 = vector.load %arg4[%c8, %c0_21] : memref<32x32xf32, #tpu.memory_space<vmem>>, vector<8x32xf32>
    %cst_22 = arith.constant dense<0.000000e+00> : vector<8x32xf32>
    %70 = tpu.matmul %68, %69, %cst_22 {dimension_numbers = #tpu.dot_dimension_numbers<[1], [0], [0], [1], [0, 0, 1, 1], [], []>} : vector<8x8xf32>, vector<8x32xf32>, vector<8x32xf32> -> vector<8x32xf32>
    %71 = arith.addf %44, %70 : vector<8x32xf32>
    %72 = vector.extract_strided_slice %4 {offsets = [0, 16], sizes = [8, 8], strides = [1, 1]} : vector<8x96xf32> to vector<8x8xf32>
    %73 = vector.extract_strided_slice %4 {offsets = [0, 48], sizes = [8, 8], strides = [1, 1]} : vector<8x96xf32> to vector<8x8xf32>
    %74 = vector.extract_strided_slice %4 {offsets = [0, 80], sizes = [8, 8], strides = [1, 1]} : vector<8x96xf32> to vector<8x8xf32>
    %cst_23 = arith.constant dense<0.000000e+00> : vector<8x8xf32>
    %75 = tpu.matmul %72, %73, %cst_23 {dimension_numbers = #tpu.dot_dimension_numbers<[1], [1], [0], [0], [0, 0, 1, 0], [], []>} : vector<8x8xf32>, vector<8x8xf32>, vector<8x8xf32> -> vector<8x8xf32>
    %cst_24 = arith.constant 0xFF800000 : f32
    %76 = vector.broadcast %cst_24 : f32 to vector<8x8xf32>
    %77 = arith.select %13, %75, %76 : vector<8x8xi1>, vector<8x8xf32>
    %cst_25 = arith.constant 0.000000e+00 : f32
    %78 = vector.shape_cast %16 : vector<8x1xi1> to vector<8x1xi1>
    %79 = vector.broadcast %78 : vector<8x1xi1> to vector<8x8xi1>
    %80 = vector.broadcast %cst_25 : f32 to vector<8x8xf32>
    %81 = arith.select %79, %80, %77 : vector<8x8xi1>, vector<8x8xf32>
    %cst_26 = arith.constant dense<0xFF800000> : vector<8xf32>
    %82 = vector.multi_reduction <maximumf>, %81, %cst_26 [1] : vector<8x8xf32> to vector<8xf32>
    %83 = vector.shape_cast %82 : vector<8xf32> to vector<8x1xf32>
    %84 = vector.broadcast %83 : vector<8x1xf32> to vector<8x8xf32>
    %85 = arith.subf %81, %84 : vector<8x8xf32>
    %86 = math.exp %85 : vector<8x8xf32>
    %cst_27 = arith.constant dense<0.000000e+00> : vector<8xf32>
    %87 = vector.multi_reduction <add>, %86, %cst_27 [1] : vector<8x8xf32> to vector<8xf32>
    %88 = vector.shape_cast %87 : vector<8xf32> to vector<8x1xf32>
    %89 = vector.broadcast %88 : vector<8x1xf32> to vector<8x8xf32>
    %90 = arith.divf %86, %89 : vector<8x8xf32>
    %cst_28 = arith.constant 0.000000e+00 : f32
    %91 = vector.shape_cast %16 : vector<8x1xi1> to vector<8x1xi1>
    %92 = vector.broadcast %91 : vector<8x1xi1> to vector<8x8xi1>
    %93 = vector.broadcast %cst_28 : f32 to vector<8x8xf32>
    %94 = arith.select %92, %93, %90 : vector<8x8xi1>, vector<8x8xf32>
    %cst_29 = arith.constant dense<0.000000e+00> : vector<8x8xf32>
    %95 = tpu.matmul %94, %74, %cst_29 {dimension_numbers = #tpu.dot_dimension_numbers<[1], [0], [0], [1], [0, 0, 1, 1], [], []>} : vector<8x8xf32>, vector<8x8xf32>, vector<8x8xf32> -> vector<8x8xf32>
    %c16 = arith.constant 16 : index
    %c0_30 = arith.constant 0 : index
    %96 = vector.load %arg4[%c16, %c0_30] : memref<32x32xf32, #tpu.memory_space<vmem>>, vector<8x32xf32>
    %cst_31 = arith.constant dense<0.000000e+00> : vector<8x32xf32>
    %97 = tpu.matmul %95, %96, %cst_31 {dimension_numbers = #tpu.dot_dimension_numbers<[1], [0], [0], [1], [0, 0, 1, 1], [], []>} : vector<8x8xf32>, vector<8x32xf32>, vector<8x32xf32> -> vector<8x32xf32>
    %98 = arith.addf %71, %97 : vector<8x32xf32>
    %99 = vector.extract_strided_slice %4 {offsets = [0, 24], sizes = [8, 8], strides = [1, 1]} : vector<8x96xf32> to vector<8x8xf32>
    %100 = vector.extract_strided_slice %4 {offsets = [0, 56], sizes = [8, 8], strides = [1, 1]} : vector<8x96xf32> to vector<8x8xf32>
    %101 = vector.extract_strided_slice %4 {offsets = [0, 88], sizes = [8, 8], strides = [1, 1]} : vector<8x96xf32> to vector<8x8xf32>
    %cst_32 = arith.constant dense<0.000000e+00> : vector<8x8xf32>
    %102 = tpu.matmul %99, %100, %cst_32 {dimension_numbers = #tpu.dot_dimension_numbers<[1], [1], [0], [0], [0, 0, 1, 0], [], []>} : vector<8x8xf32>, vector<8x8xf32>, vector<8x8xf32> -> vector<8x8xf32>
    %cst_33 = arith.constant 0xFF800000 : f32
    %103 = vector.broadcast %cst_33 : f32 to vector<8x8xf32>
    %104 = arith.select %13, %102, %103 : vector<8x8xi1>, vector<8x8xf32>
    %cst_34 = arith.constant 0.000000e+00 : f32
    %105 = vector.shape_cast %16 : vector<8x1xi1> to vector<8x1xi1>
    %106 = vector.broadcast %105 : vector<8x1xi1> to vector<8x8xi1>
    %107 = vector.broadcast %cst_34 : f32 to vector<8x8xf32>
    %108 = arith.select %106, %107, %104 : vector<8x8xi1>, vector<8x8xf32>
    %cst_35 = arith.constant dense<0xFF800000> : vector<8xf32>
    %109 = vector.multi_reduction <maximumf>, %108, %cst_35 [1] : vector<8x8xf32> to vector<8xf32>
    %110 = vector.shape_cast %109 : vector<8xf32> to vector<8x1xf32>
    %111 = vector.broadcast %110 : vector<8x1xf32> to vector<8x8xf32>
    %112 = arith.subf %108, %111 : vector<8x8xf32>
    %113 = math.exp %112 : vector<8x8xf32>
    %cst_36 = arith.constant dense<0.000000e+00> : vector<8xf32>
    %114 = vector.multi_reduction <add>, %113, %cst_36 [1] : vector<8x8xf32> to vector<8xf32>
    %115 = vector.shape_cast %114 : vector<8xf32> to vector<8x1xf32>
    %116 = vector.broadcast %115 : vector<8x1xf32> to vector<8x8xf32>
    %117 = arith.divf %113, %116 : vector<8x8xf32>
    %cst_37 = arith.constant 0.000000e+00 : f32
    %118 = vector.shape_cast %16 : vector<8x1xi1> to vector<8x1xi1>
    %119 = vector.broadcast %118 : vector<8x1xi1> to vector<8x8xi1>
    %120 = vector.broadcast %cst_37 : f32 to vector<8x8xf32>
    %121 = arith.select %119, %120, %117 : vector<8x8xi1>, vector<8x8xf32>
    %cst_38 = arith.constant dense<0.000000e+00> : vector<8x8xf32>
    %122 = tpu.matmul %121, %101, %cst_38 {dimension_numbers = #tpu.dot_dimension_numbers<[1], [0], [0], [1], [0, 0, 1, 1], [], []>} : vector<8x8xf32>, vector<8x8xf32>, vector<8x8xf32> -> vector<8x8xf32>
    %c24 = arith.constant 24 : index
    %c0_39 = arith.constant 0 : index
    %123 = vector.load %arg4[%c24, %c0_39] : memref<32x32xf32, #tpu.memory_space<vmem>>, vector<8x32xf32>
    %cst_40 = arith.constant dense<0.000000e+00> : vector<8x32xf32>
    %124 = tpu.matmul %122, %123, %cst_40 {dimension_numbers = #tpu.dot_dimension_numbers<[1], [0], [0], [1], [0, 0, 1, 1], [], []>} : vector<8x8xf32>, vector<8x32xf32>, vector<8x32xf32> -> vector<8x32xf32>
    %125 = arith.addf %98, %124 : vector<8x32xf32>
    %c0_41 = arith.constant 0 : index
    %c0_42 = arith.constant 0 : index
    %126 = vector.load %arg5[%c0_41, %c0_42] : memref<1x32xf32, #tpu.memory_space<vmem>>, vector<1x32xf32>
    %127 = vector.broadcast %126 : vector<1x32xf32> to vector<8x32xf32>
    %128 = arith.addf %125, %127 : vector<8x32xf32>
    %c0_43 = arith.constant 0 : index
    %c0_44 = arith.constant 0 : index
    %129 = vector.load %arg6[%c0_43, %c0_44] : memref<8x32xf32, #tpu.memory_space<vmem>>, vector<8x32xf32>
    tpu.vector_store %arg6[%c0_43, %c0_44], %128 {strides = array<i32>} : memref<8x32xf32, #tpu.memory_space<vmem>>, vector<8x32xf32>,
    return
  }
  func.func @transform_0(%arg0: i32, %arg1: memref<2xi32, #tpu.memory_space<smem>>) -> (i32, i32) {
    %c0_i32 = arith.constant 0 : i32
    %c0_i32_0 = arith.constant 0 : i32
    return %arg0, %c0_i32 : i32, i32
  }
  func.func @transform_1(%arg0: i32, %arg1: memref<2xi32, #tpu.memory_space<smem>>) -> (i32, i32) {
    %c0_i32 = arith.constant 0 : i32
    %c0_i32_0 = arith.constant 0 : i32
    %c0_i32_1 = arith.constant 0 : i32
    return %c0_i32, %c0_i32_0 : i32, i32
  }
  func.func @transform_2(%arg0: i32, %arg1: memref<2xi32, #tpu.memory_space<smem>>) -> (i32, i32) {
    %c0_i32 = arith.constant 0 : i32
    %c0_i32_0 = arith.constant 0 : i32
    %c0_i32_1 = arith.constant 0 : i32
    return %c0_i32, %c0_i32_0 : i32, i32
  }
  func.func @transform_3(%arg0: i32, %arg1: memref<2xi32, #tpu.memory_space<smem>>) -> (i32, i32) {
    %c0_i32 = arith.constant 0 : i32
    %c0_i32_0 = arith.constant 0 : i32
    %c0_i32_1 = arith.constant 0 : i32
    return %c0_i32, %c0_i32_0 : i32, i32
  }
  func.func @transform_4(%arg0: i32, %arg1: memref<2xi32, #tpu.memory_space<smem>>) -> (i32, i32) {
    %c0_i32 = arith.constant 0 : i32
    %c0_i32_0 = arith.constant 0 : i32
    return %arg0, %c0_i32 : i32, i32
  }
}

</mosaic_0001>

<bundles_post_ra>
// kernel: tpu_custom_call.1
= control target key start
LH: loop header
LB: loop body
LE: loop exit
PB: predicated region body
PF: predicated region fallthrough
CT: control target
= control target key end

     0   :  { %s1140_s21 = smov [#allocation3]   ;;  %s1424_s0 = inlined_call_operand.hbm [shape: s32[2], index: 0, kind: input, shape index: {}]   ;;  %s1425_s1 = inlined_call_operand.hbm [shape: f32[16,32], index: 1, kind: input, shape index: {}]   ;;  %s1426_s2 = inlined_call_operand.hbm [shape: f32[32,96], index: 2, kind: input, shape index: {}]   ;;  %s1427_s3 = inlined_call_operand.hbm [shape: f32[32,32], index: 3, kind: input, shape index: {}]   ;;  %s1428_s4 = inlined_call_operand.vmem [shape: f32[1,32], index: 4, kind: input, shape index: {}]   ;;  %s1429_s5 = inlined_call_operand.hbm [shape: f32[16,32], index: 5, kind: output, shape index: {}]  }
   0x1   :  { %s11_s20 = sshll.u32 %s1424_s0, 4  ;;  %s12_s20 = int_to_ptr.hbm [resolvable:$true] %s11_s20 }
   0x2   :  { %14 = dma.hbm_to_smem %s12_s20, 16, %s1140_s21, [#allocation2] }
   0x3   :  { %1110 = dma.done.wait [#allocation2], 16 }
   0x4   :  { %1111 = vsyncadd [#allocation2], 4294967280 }
   0x5   :  { %17 = sfence }
   0x6   :  { %18 = vsyncpa [#allocation5], 0 }
   0x7   :  { %20 = vsyncpa [#allocation5 + $0x1], 0 }
   0x8   :  { %21 = vsyncpa [#allocation8], 0 }
   0x9   :  { %22 = vsyncpa [#allocation6], 0 }
   0xa   :  { %24 = vsyncpa [#allocation6 + $0x1], 0  ;;  %s1189_s22 = smov 0   ;;  %s1191_s23 = smov 0  }
   0xb   :  { %s1193_s24 = smov 0   ;;  %s1195_s25 = smov 0  }
   0xc LB: > { %s161_s27 = sshll.u32 %s1426_s2, 4  ;;  %s1213_s28 = sadd.s32 4294967295, %s1138_s25   ;;  %s1138_s25 = sphi %s1195_s25, %s1444_s25   ;;  %s1134_s24 = sphi %s1193_s24, %s1443_s24   ;;  %s1130_s23 = sphi %s1191_s23, %s1442_s23   ;;  %s1126_s22 = sphi %s1189_s22, %s1441_s22   ;;  %s162_s27 = int_to_ptr.hbm [resolvable:$true] %s161_s27 }
   0xd   : > { %p834_p0 = scmp.ge.s32.totalorder %s1138_s25, 1  ;;  %p51_p1 = scmp.eq.s32.totalorder %s1213_s28, 0 }
   0xe   : > { %p150_p2 = scmp.lt.s32.totalorder %s1138_s25, 3  ;;  %s1141_s30 = smov [#allocation7]  }
   0xf   : > { %s163_s6 = sshll.u32 %s1141_s30, 4  ;;  %s175_s9 = sshll.u32 %s1427_s3, 4  ;;  %s164_s6 = int_to_ptr.vmem [resolvable:$true] %s163_s6  ;;  %s176_s9 = int_to_ptr.hbm [resolvable:$true] %s175_s9 }
  0x10   : > { %p1218_p3 = pnand %p834_p0, %p150_p2  ;;  %s1142_s10 = smov [#allocation9]  }
  0x11   : > { %s177_s11 = sshll.u32 %s1142_s10, 4  ;;  %s1143_s12 = smov 128   ;;  %s178_s11 = int_to_ptr.vmem [resolvable:$true] %s177_s11 }
  0x12   : > { %p878_p4 = pneg %p1218_p3  ;;  %s1144_s13 = smov 8  }
  0x13   : > { %s833_s14 = sadd.s32 4294967294, %s1138_s25   ;;  %s1232_s15 = sadd.s32 1, %s1138_s25  }
  0x14   : > { %p879_p6 = pnand %p878_p4, %p51_p1  ;;  %s34_s16 = ssub.s32 %s1138_s25, %s1232_s15 }
  0x15   : > { %s37_s17 = sadd.s32 1, %s1134_s24  ;;  %p35_p7 = scmp.eq.s32.totalorder %s34_s16, 0 }
  0x16   : > { %881 = dma.hbm_to_vmem [thread:$0]  (!%p879_p6), %s162_s27, 512, %s164_s6, [#allocation8], %s1143_s12, %s1143_s12, %s1144_s13  }
  0x17   : > { %884 = dma.hbm_to_vmem [thread:$0]  (!%p879_p6), %s176_s9, 512, %s178_s11, [#allocation8], %s1143_s12, %s1143_s12, %s1144_s13  }
  0x18   : > { %p44_p8 = scmp.ne.s32.totalorder %s1134_s24, %s1130_s23  ;;  %p45_p9 = scmp.eq.s32.totalorder %s1138_s25, 0 }
  0x19   : > { %p50_p10 = scmp.ne.s32.totalorder %s1130_s23, %s1126_s22  ;;  %p137_p13 = scmp.eq.s32.totalorder %s1213_s28, 1 }
  0x1a   : > { %s1243_s18 = scalar_select %p35_p7, %s1134_s24, %s37_s17  }
  0x1b   : > { %p1245_p11 = por %p45_p9, %p44_p8  ;;  %p1251_p12 = por %p51_p1, %p50_p10 }
  0x1c   : > { %p143_p0 = scmp.eq.s32.totalorder %s833_s14, 1  ;;  %p895_p2 = scmp.lt.s32.totalorder %s1138_s25, 2 }
  0x1d   : > { %s194_s21 = sand.u32 1, %s1134_s24   ;;  %p1258_p4 = por %p137_p13, %p44_p8 }
  0x1e   : > { %p1262_p6 = por %p143_p0, %p50_p10  ;;  %s838_s27 = sshll.u32 %s194_s21, 3 }
  0x1f   : > { %s839_s30 = sshll.u32 %s1138_s25, 3  ;;  %s198_s9 = scalar_lea.vmem [#allocation4], %s838_s27 }
  0x20   : > { %s202_s8 = scalar_lea.hbm %s1425_s1, %s839_s30  ;;  %s206_s10 = sshll.u32 %s198_s9, 4  ;;  %s207_s10 = int_to_ptr.vmem [resolvable:$true] %s206_s10 }
  0x21   : > { %s204_s11 = sshll.u32 %s202_s8, 4  ;;  %p1272_p7 = pnand %p895_p2, %p1245_p11  ;;  %s205_s11 = int_to_ptr.hbm [resolvable:$true] %s204_s11 }
  0x22   : > { %s195_s13 = scalar_lea.sflag [#allocation5], %s194_s21  ;;  %s1036_s14 = sshra.s32 %s205_s11, 4  ;;  %s1037_s14 = int_to_ptr.hbm [resolvable:$true] %s1036_s14 }
  0x23   : > { %s1038_s16 = scalar_lea.hbm %s1037_s14, 8  ;;  %p1040_p9 = pneg %p1272_p7 }
  0x24   : > { %p1039_p8 = scmp.ne.s32.totalorder %s1037_s14, %s1038_s16  ;;  %s1043_s30 = scalar_lea.hbm %s1425_s1, 16 }
  0x25   : > { %p1044_p11 = scmp.lt.s32.totalorder %s1037_s14, %s1425_s1  ;;  %p1045_p0 = scmp.lt.s32.totalorder %s1043_s30, %s1038_s16 }
  0x26   : > { %p1041_p10 = pnand %p1040_p9, %p1039_p8 }
  0x27   : > { %p1046_p2 = por %p1045_p0, %p1044_p11 }
  0x28   : > { %p1042_p13 = pneg %p1041_p10 }
  0x2a   : > { %p1047_p5 = pnand %p1046_p2, %p1042_p13 }
  0x2c   : > { %1050 = shalt.err (!%p1047_p5)
}
  0x2d   : > { %888 = dma.hbm_to_vmem [thread:$0]  (!%p1272_p7), %s205_s11, 128, %s207_s10, %s195_s13  }
  0x2e   : > { %215 = sbr.rel (%p1218_p3) target bundleno = 1510 (0x5e6), region = 36  ;;  %s1289_s21 = sand.u32 (!%p1218_p3), 1, %s1130_s23  }
  0x2f   : > { %s841_s7 = sshll.u32 (!%p1218_p3), %s1289_s21, 3  ;;  %s218_s8 = scalar_lea.sflag (!%p1218_p3), [#allocation5], %s1289_s21 }
  0x30   : > { %s221_s9 = scalar_lea.vmem (!%p1218_p3), [#allocation4], %s841_s7 }
  0x33   : > { %1113 = dma.done.wait (%p1251_p12), %s218_s8, 128  }
  0x34   : > { %1115 = vsyncadd (%p1251_p12), %s218_s8, 4294967168 }
  0x35   : > { %1117 = dma.done.wait (%p51_p1), [#allocation8], 1024  }
  0x36   : > { %1119 = vsyncadd (%p51_p1), [#allocation8], 4294966272  ;;  %v262_v0 = vld [vmem:[#allocation7 + $0x18] sm:$0xff]  ;;  %v261_v1 = vld [vmem:[#allocation7 + $0x10] sm:$0xff]  ;;  %vm263_vm0 = vcmask 261120   ;;  %s1145_s29 = smov 88   ;;  %v287_v13 = vlaneseq }
  0x37   : > { %279 = vmatpush.msra.mxu0 %v262_v0  ;;  %v260_v2 = vld [vmem:[#allocation7 + $0x8] sm:$0xff]  ;;  %v259_v3 = vld [vmem:[#allocation7] sm:$0xff]  ;;  %v258_v4 = vld [vmem:[%s221_s9] sm:$0xff]  ;;  %s1146_s20 = smov 96   ;;  %s1147_s10 = smov 120   ;;  %vm301_vm1 = vcmask 64512  }
  0x38   : > { %s1148_s11 = smov 72   ;;  %s1149_s12 = smov 104   ;;  %v381_v6 = vld [vmem:[#allocation9] sm:$0xff]  ;;  %v288_v14 = vshrl.u32 %v287_v13, 7  ;;  %v290_v15 = vand.u32 127, %v287_v13 }
  0x39   : > { %280 = vmatpush.msra.mxu0 %v261_v1  ;;  %s1150_s13 = smov 80   ;;  %s257_s14 = sld [smem:[#allocation3 + %s1213_s28]] }
  0x3a   : > { %vm295_vm5 = vcmp.ge.s32.totalorder %v288_v14, %v290_v15  ;;  %s1151_s16 = smov 56   ;;  %s1152_s17 = smov 64  }
  0x3b   : > { %281 = vmatpush.msra.mxu0 %v260_v2  ;;  %s1153_s27 = smov 112   ;;  %s1154_s30 = smov 40  }
  0x3c   : > { %s1155_s6 = smov 48   ;;  %s863_s19 = sshll.u32 %s1213_s28, 3 }
  0x3d   : > { %282 = vmatpush.msra.mxu0 %v259_v3  ;;  %s729_s28 = scalar_lea.sflag [#allocation6], %s1289_s21 }
  0x3e   : > { %845 = vmatmul.msk.f32.vlgmr.msra.gmra.mxu0 %vm263_vm0, %v258_v4 }
  0x3f   : > { %v291_v16 = vstv %s257_s14 }
  0x40   : > { %vm292_vm2 = vcmp.lt.s32.totalorder %v288_v14, %v291_v16  ;;  %vm293_vm3 = vcmp.lt.s32.totalorder %v290_v15, %v291_v16  ;;  %vm1326_vm7 = vcmp.ge.s32.totalorder %v288_v14, %v291_v16 }
  0x41   : > { %vm294_vm4 = vmand %vm292_vm2, %vm293_vm3 }
  0x42   : > { %vm1322_vm6 = vmand %vm294_vm4, %vm295_vm5 }
  0xbb   : > { %v1304_v5 = vpop.f32.mrf.mxu0 }
  0xbc   : > { %384 = vrot.lane.b32.xlu2 %v1304_v5, %s1145_s29  ;;  %299 = vrot.lane.b32.xlu0 %v1304_v5, %s1146_s20  ;;  %s739_s29 = scalar_lea.hbm %s1429_s5, %s863_s19 }
  0xc4   : > { %382 = vrot.lane.b32.xlu2 %v1304_v5, %s1147_s10 }
  0xcc   : > { %618 = vrot.lane.b32.xlu2 %v1304_v5, %s1148_s11  ;;  %s256_s11 = scalar_lea.vmem [#allocation10], %s841_s7  ;;  %s1086_s7 = scalar_lea.hbm %s1429_s5, 16 }
  0xd4   : > { %616 = vrot.lane.b32.xlu2 %v1304_v5, %s1149_s12  ;;  %s741_s12 = sshll.u32 %s256_s11, 4  ;;  %s742_s12 = int_to_ptr.vmem [resolvable:$true] %s741_s12 }
  0xdc   : > { %512 = vrot.lane.b32.xlu2 %v1304_v5, %s1150_s13  ;;  %s743_s13 = sshll.u32 %s739_s29, 4  ;;  %s744_s13 = int_to_ptr.hbm [resolvable:$true] %s743_s13 }
  0xdd   : > { %s1080_s14 = sshra.s32 %s744_s13, 4  ;;  %s1081_s14 = int_to_ptr.hbm [resolvable:$true] %s1080_s14 }
  0xde   : > { %p1087_p12 = scmp.lt.s32.totalorder %s1081_s14, %s1429_s5 }
 0x116   : > { %v385_v7 = vpop.permute.xlu2 %384 }
 0x117   : > { %849 = vmatpush.xpose.msk.msra.mxu3 %vm301_vm1, %v385_v7 }
 0x11b   : > { %505 = vmatpush.msrb.mxu3 %v381_v6 }
 0x11e   : > { %v383_v8 = vpop.permute.xlu2 %382 }
 0x11f   : > { %850 = vmatmul.msk.f32.vlgmr.msra.gmra.mxu3 %vm301_vm1, %v383_v8 }
 0x126   : > { %v619_v9 = vpop.permute.xlu2 %618 }
 0x127   : > { %858 = vmatpush.xpose.msk.msra.mxu3 %vm301_vm1, %v619_v9 }
 0x12e   : > { %v1315_v10 = vpop.permute.xlu2 %616  ;;  %v300_v11 = vpop.permute.xlu0 %299 }
 0x12f   : > { %846 = vmatpush.xpose.msk.msra.mxu1 %vm301_vm1, %v300_v11 }
 0x132   : > { %847 = vmatmul.msk.f32.vlgmr.msra.gmra.mxu1 %vm301_vm1, %v1304_v5 }
 0x136   : > { %v513_v12 = vpop.permute.xlu2 %512 }
 0x137   : > { %854 = vmatpush.xpose.msk.msrb.mxu0 %vm301_vm1, %v513_v12 }
 0x1a2   : > { %v407_v19 = vpop.f32.mrf.mxu3 }
 0x1a3   : > { %v410_v20 = vsel %vm1322_vm6, %v407_v19, -inf }
 0x1a4   : > { %v411_v21 = vsel %vm1326_vm7, 0.0, %v410_v20 }
 0x1a5   : > { %v412_v22 = vsel %vm301_vm1, %v411_v21, -inf }
 0x1a6   : > { %413 = vmax.xlane.f32.xlu2 %v412_v22 }
 0x1af   : > { %v323_v23 = vpop.f32.mrf.mxu1 }
 0x1b0   : > { %v326_v24 = vsel %vm1322_vm6, %v323_v23, -inf }
 0x1b1   : > { %v329_v25 = vsel %vm1326_vm7, 0.0, %v326_v24 }
 0x1b2   : > { %v330_v26 = vsel %vm301_vm1, %v329_v25, -inf }
 0x1b3   : > { %331 = vmax.xlane.f32.xlu0 %v330_v26 }
 0x1be   : > { %437 = vrot.lane.b32.xlu2 %v1304_v5, %s1151_s16  ;;  %s1082_s16 = scalar_lea.hbm %s1081_s14, 8 }
 0x1bf   : > { %p1083_p1 = scmp.ne.s32.totalorder %s1081_s14, %s1082_s16  ;;  %p1088_p7 = scmp.lt.s32.totalorder %s1086_s7, %s1082_s16 }
 0x1c1   : > { %p1084_p3 = pnand %p1083_p1, %p1258_p4  ;;  %p1089_p8 = por %p1088_p7, %p1087_p12 }
 0x1c3   : > { %p1085_p5 = pneg %p1084_p3 }
 0x1c5   : > { %p1090_p9 = pnand %p1089_p8, %p1085_p5 }
 0x219   : > { %v414_v40 = vpop.xlane.xlu2 %413 }
 0x21a   : > { %v415_v55 = vsub.f32 %v411_v21, %v414_v40 }
 0x21c   : > { %v416_v57 = vmul.f32 1.442695, %v415_v55  ;;  %v591_v55 = vld [vmem:[#allocation9 + $0x10] sm:$0xff] }
 0x221   : > { %v438_v47 = vpop.permute.xlu2 %437 }
 0x226   : > { %v332_v27 = vpop.xlane.xlu0 %331 }
 0x227   : > { %v333_v28 = vsub.f32 %v329_v25, %v332_v27 }
 0x229   : > { %v334_v29 = vmul.f32 1.442695, %v333_v28 }
 0x22b   : > { %948 = vpow2.f32 %v334_v29 }
 0x231   : > { %v949_v30 = vpop.eup %948 }
 0x232   : > { %v336_v31 = vsel %vm301_vm1, %v949_v30, 0.0 }
 0x233   : > { %337 = vadd.xlane.f32.xlu1 %v336_v31 }
 0x24c   : > { %355 = vrot.lane.b32.xlu1 %v1304_v5, %s1152_s17 }
 0x254   : > { %510 = vrot.lane.b32.xlu1 %v1304_v5, %s1153_s27 }
 0x2a6   : > { %v338_v32 = vpop.xlane.xlu1 %337 }
 0x2a7   : > { %950 = vrcp.f32 %v338_v32  ;;  %v350_v37 = vand.u32 2147483648, %v338_v32  ;;  %v348_v38 = vand.u32 2147483647, %v338_v32  ;;  %vm344_vm9 = vweird.f32 %v338_v32 }
 0x2a8   : > { %952 = vpow2.f32 %v416_v57 }
 0x2a9   : > { %v351_v41 = vor.u32 1.1754944e-38, %v350_v37  ;;  %vm349_vm11 = vcmp.eq.f32.partialorder %v348_v38, 8.507059e+37 }
 0x2ad   : > { %v951_v33 = vpop.eup %950 }
 0x2ae   : > { %v340_v34 = vmul.f32 %v951_v33, %v338_v32  ;;  %vm345_vm8 = vweird.f32 %v951_v33  ;;  %v953_v1 = vpop.eup %952 }
 0x2af   : > { %vm346_vm10 = vmor %vm344_vm9, %vm345_vm8  ;;  %v418_v2 = vsel %vm301_vm1, %v953_v1, 0.0 }
 0x2b0   : > { %v341_v35 = vsub.f32 1.0, %v340_v34 }
 0x2b2   : > { %v342_v36 = vmul.f32 %v951_v33, %v341_v35 }
 0x2b4   : > { %v343_v39 = vadd.f32 %v951_v33, %v342_v36 }
 0x2b6   : > { %v347_v42 = vsel %vm346_vm10, %v951_v33, %v343_v39 }
 0x2b7   : > { %v352_v43 = vsel %vm349_vm11, %v351_v41, %v347_v42 }
 0x2b8   : > { %v353_v44 = vmul.f32 %v949_v30, %v352_v43  ;;  %v463_v30 = vld [vmem:[#allocation9 + $0x8] sm:$0xff] }
 0x2b9   : > { %482 = vmatpush.msrb.mxu1 %v463_v30 }
 0x2ba   : > { %v354_v46 = vsel %vm1326_vm7, 0.0, %v353_v44 }
 0x2bb   : > { %610 = vmatpush.msra.mxu1 %v591_v55 }
 0x2be   : > { %v356_v45 = vpop.permute.xlu1 %355 }
 0x2bf   : > { %376 = vmatpush.msra.mxu2 %v356_v45 }
 0x2c0   : > { %848 = vmatmul.msk.f32.vlgmr.msra.gmra.mxu2 %vm301_vm1, %v354_v46 }
 0x2c1   : > { %458 = vmatpush.msrb.mxu2 %v438_v47 }
 0x2c6   : > { %v511_v48 = vpop.permute.xlu1 %510 }
 0x2c7   : > { %855 = vmatmul.msk.f32.vlgmr.msrb.gmra.mxu0 %vm301_vm1, %v511_v48 }
 0x343   : > { %v378_v49 = vpop.f32.mrf.mxu2 }
 0x344   : > { %853 = vmatmul.msk.f32.vlgmr.msrb.gmra.mxu3 %vm301_vm1, %v378_v49  ;;  %v535_v50 = vpop.f32.mrf.mxu0 }
 0x345   : > { %v538_v51 = vsel %vm1322_vm6, %v535_v50, -inf }
 0x346   : > { %v539_v52 = vsel %vm1326_vm7, 0.0, %v538_v51 }
 0x347   : > { %v540_v53 = vsel %vm301_vm1, %v539_v52, -inf }
 0x348   : > { %541 = vmax.xlane.f32.xlu1 %v540_v53  ;;  %v697_v53 = vld [vmem:[#allocation9 + $0x18] sm:$0xff] }
 0x34c   : > { %859 = vmatmul.msk.f32.vlgmr.msra.gmra.mxu3 %vm301_vm1, %v1315_v10 }
 0x361   : > { %671 = vrot.lane.b32.xlu1 %v1304_v5, %s1154_s30 }
 0x3bb   : > { %v542_v56 = vpop.xlane.xlu1 %541 }
 0x3bc   : > { %v543_v60 = vsub.f32 %v539_v52, %v542_v56 }
 0x3be   : > { %v544_v0 = vmul.f32 1.442695, %v543_v60 }
 0x3c0   : > { %954 = vpow2.f32 %v544_v0 }
 0x3c6   : > { %v1365_v3 = vpop.eup %954 }
 0x3c7   : > { %v1357_v54 = vpop.f32.mrf.mxu3  ;;  %v546_v4 = vsel %vm301_vm1, %v1365_v3, 0.0 }
 0x3cf   : > { %v641_v58 = vpop.f32.mrf.mxu3 }
 0x3d0   : > { %v644_v59 = vsel %vm1322_vm6, %v641_v58, -inf }
 0x3d1   : > { %v645_v61 = vsel %vm1326_vm7, 0.0, %v644_v59 }
 0x3d2   : > { %v646_v62 = vsel %vm301_vm1, %v645_v61, -inf }
 0x3d3   : > { %647 = vmax.xlane.f32.xlu0 %v646_v62  ;;  %v672_v63 = vpop.permute.xlu1 %671 }
 0x3d4   : > { %692 = vmatpush.msra.mxu0 %v672_v63 }
 0x3db   : > { %419 = vadd.xlane.f32.xlu0 %v418_v2 }
 0x3e3   : > { %547 = vadd.xlane.f32.xlu0 %v546_v4 }
 0x446   : > { %v648_v6 = vpop.xlane.xlu0 %647 }
 0x447   : > { %v649_v7 = vsub.f32 %v645_v61, %v648_v6  ;;  %v947_v61 = vld [vmem:[%s1428_s4] ss:$0 sm:$0xff] }
 0x449   : > { %v650_v8 = vmul.f32 1.442695, %v649_v7 }
 0x44b   : > { %956 = vpow2.f32 %v650_v8 }
 0x44e   : > { %v420_v9 = vpop.xlane.xlu0 %419 }
 0x44f   : > { %958 = vrcp.f32 %v420_v9  ;;  %v432_v15 = vand.u32 2147483648, %v420_v9  ;;  %v430_v17 = vand.u32 2147483647, %v420_v9  ;;  %vm426_vm13 = vweird.f32 %v420_v9 }
 0x451   : > { %v957_v10 = vpop.eup %956  ;;  %v433_v20 = vor.u32 1.1754944e-38, %v432_v15  ;;  %vm431_vm15 = vcmp.eq.f32.partialorder %v430_v17, 8.507059e+37 }
 0x452   : > { %v652_v11 = vsel %vm301_vm1, %v957_v10, 0.0 }
 0x453   : > { %653 = vadd.xlane.f32.xlu0 %v652_v11 }
 0x455   : > { %v959_v12 = vpop.eup %958 }
 0x456   : > { %v422_v13 = vmul.f32 %v959_v12, %v420_v9  ;;  %vm427_vm12 = vweird.f32 %v959_v12  ;;  %v548_v25 = vpop.xlane.xlu0 %547 }
 0x457   : > { %vm428_vm14 = vmor %vm426_vm13, %vm427_vm12  ;;  %960 = vrcp.f32 %v548_v25  ;;  %v560_v34 = vand.u32 2147483648, %v548_v25  ;;  %vm554_vm3 = vweird.f32 %v548_v25  ;;  %v558_v35 = vand.u32 2147483647, %v548_v25 }
 0x458   : > { %v423_v14 = vsub.f32 1.0, %v422_v13 }
 0x459   : > { %v561_v38 = vor.u32 1.1754944e-38, %v560_v34  ;;  %vm559_vm5 = vcmp.eq.f32.partialorder %v558_v35, 8.507059e+37 }
 0x45a   : > { %v424_v16 = vmul.f32 %v959_v12, %v423_v14 }
 0x45c   : > { %v425_v19 = vadd.f32 %v959_v12, %v424_v16 }
 0x45d   : > { %v961_v26 = vpop.eup %960 }
 0x45e   : > { %v429_v21 = vsel %vm428_vm14, %v959_v12, %v425_v19  ;;  %v550_v27 = vmul.f32 %v961_v26, %v548_v25  ;;  %vm555_vm2 = vweird.f32 %v961_v26 }
 0x45f   : > { %v434_v22 = vsel %vm431_vm15, %v433_v20, %v429_v21  ;;  %vm556_vm4 = vmor %vm554_vm3, %vm555_vm2 }
 0x460   : > { %v435_v23 = vmul.f32 %v953_v1, %v434_v22  ;;  %v551_v28 = vsub.f32 1.0, %v550_v27 }
 0x462   : > { %v436_v24 = vsel %vm1326_vm7, 0.0, %v435_v23  ;;  %v552_v31 = vmul.f32 %v961_v26, %v551_v28 }
 0x463   : > { %851 = vmatmul.msk.f32.vlgmr.msrb.gmra.mxu2 %vm301_vm1, %v436_v24 }
 0x464   : > { %v553_v32 = vadd.f32 %v961_v26, %v552_v31 }
 0x467   : > { %565 = vrot.lane.b32.xlu0 %v1304_v5, %s1155_s6  ;;  %v557_v5 = vsel %vm556_vm4, %v961_v26, %v553_v32 }
 0x468   : > { %v562_v42 = vsel %vm559_vm5, %v561_v38, %v557_v5 }
 0x469   : > { %v563_v45 = vmul.f32 %v1365_v3, %v562_v42 }
 0x46b   : > { %v564_v50 = vsel %vm1326_vm7, 0.0, %v563_v45 }
 0x4c6   : > { %v654_v29 = vpop.xlane.xlu0 %653 }
 0x4c7   : > { %962 = vrcp.f32 %v654_v29  ;;  %v666_v39 = vand.u32 2147483648, %v654_v29  ;;  %v664_v41 = vand.u32 2147483647, %v654_v29  ;;  %vm660_vm8 = vweird.f32 %v654_v29 }
 0x4c9   : > { %v667_v44 = vor.u32 1.1754944e-38, %v666_v39  ;;  %vm665_vm10 = vcmp.eq.f32.partialorder %v664_v41, 8.507059e+37 }
 0x4cd   : > { %v963_v33 = vpop.eup %962 }
 0x4ce   : > { %v656_v36 = vmul.f32 %v963_v33, %v654_v29  ;;  %vm661_vm6 = vweird.f32 %v963_v33 }
 0x4cf   : > { %vm662_vm9 = vmor %vm660_vm8, %vm661_vm6 }
 0x4d0   : > { %v657_v37 = vsub.f32 1.0, %v656_v36 }
 0x4d2   : > { %v658_v40 = vmul.f32 %v963_v33, %v657_v37 }
 0x4d4   : > { %v659_v43 = vadd.f32 %v963_v33, %v658_v40 }
 0x4d6   : > { %v663_v46 = vsel %vm662_vm9, %v963_v33, %v659_v43 }
 0x4d7   : > { %v668_v47 = vsel %vm665_vm10, %v667_v44, %v663_v46 }
 0x4d8   : > { %v669_v48 = vmul.f32 %v957_v10, %v668_v47 }
 0x4d9   : > { %v566_v49 = vpop.permute.xlu0 %565 }
 0x4da   : > { %586 = vmatpush.msra.mxu2 %v566_v49  ;;  %v670_v51 = vsel %vm1326_vm7, 0.0, %v669_v48 }
 0x4db   : > { %856 = vmatmul.msk.f32.vlgmr.msra.gmra.mxu2 %vm301_vm1, %v564_v50  ;;  %860 = vmatmul.msk.f32.vlgmr.msra.gmra.mxu0 %vm301_vm1, %v670_v51 }
 0x4dc   : > { %716 = vmatpush.msrb.mxu2 %v697_v53 }
 0x4e6   : > { %v460_v52 = vpop.f32.mrf.mxu2 }
 0x4e7   : > { %852 = vmatmul.msk.f32.vlgmr.msrb.gmra.mxu1 %vm301_vm1, %v460_v52 }
 0x558   : > { %v694_v56 = vpop.f32.mrf.mxu0 }
 0x559   : > { %861 = vmatmul.msk.f32.vlgmr.msrb.gmra.mxu2 %vm301_vm1, %v694_v56 }
 0x55e   : > { %v588_v57 = vpop.f32.mrf.mxu2 }
 0x55f   : > { %857 = vmatmul.msk.f32.vlgmr.msra.gmra.mxu1 %vm301_vm1, %v588_v57 }
 0x564   : > { %v484_v18 = vpop.f32.mrf.mxu1 }
 0x565   : > { %v508_v58 = vadd.f32 %v1357_v54, %v484_v18 }
 0x5dc   : > { %v612_v59 = vpop.f32.mrf.mxu1  ;;  %v718_v62 = vpop.f32.mrf.mxu2 }
 0x5dd   : > { %v615_v60 = vadd.f32 %v612_v59, %v508_v58 }
 0x5df   : > { %v721_v63 = vadd.f32 %v718_v62, %v615_v60 }
 0x5e1   : > { %v726_v0 = vadd.f32 %v947_v61, %v721_v63 }
 0x5e3   : > { %727 = vst.msk [vmem:[%s256_s11] sm:$0xff] %vm263_vm0, %v726_v0 }
 0x5e4   : > { %1093 = shalt.err (!%p1090_p9)
}
 0x5e5   : > { %876 = dma.vmem_to_hbm [thread:$0]  (%p1258_p4), %s742_s12, 128, %s744_s13, %s729_s28  }
 0x5e6 PF: > { %s755_s21 = sand.u32 1, %s1126_s22   ;;  %p1440_p10 = scmp.ge.s32.totalorder %s1138_s25, 2 }
 0x5e7   : > { %s756_s19 = scalar_lea.sflag [#allocation6], %s755_s21 }
 0x5e8   : > { %p890_p13 = pnand %p1440_p10, %p1262_p6 }
 0x5ea   : > { %p891_p11 = pneg %p890_p13 }
 0x5ec   : > { %1121 = dma.done.wait (%p891_p11), %s756_s19, 128  }
 0x5ed   : > { %1123 = vsyncadd (%p891_p11), %s756_s19, 4294967168  ;;  %p27_p0 = scmp.ge.s32.totalorder %s1232_s15, 4   ;;  %s1441_s22 = smov %s1130_s23 }
 0x5ee   : > { %s1442_s23 = smov %s1134_s24  ;;  %s1443_s24 = smov %s1243_s18 }
 0x5ef   : > { %s1444_s25 = smov %s1232_s15  ;;  %29 = sbr.rel (!%p27_p0) target bundleno = 12 (0xc), region = 89 }
 0x5f4   :  { %762 = vsyncpa [#allocation5], 1 }
 0x5f5   :  { %764 = vsyncpa [#allocation5 + $0x1], 1 }
 0x5f6   :  { %765 = vsyncpa [#allocation8], 1 }
 0x5f7   :  { %766 = vsyncpa [#allocation6], 1 }
 0x5f8   :  { %768 = vsyncpa [#allocation6 + $0x1], 1 }

</bundles_post_ra>
